<compile_context>
chip_gen: v7x
topology: tpu7x:2x2x1
jax: 0.10.0
libtpu: 0.0.40
codegen_flags: <defaults>
</compile_context>

<pallas_src>
import math

import jax
import jax.numpy as jnp
from jax.experimental import pallas as pl
from jax.experimental.pallas import tpu as pltpu

# ---------------------------------------------------------------------------
# Streaming-fallback constants
# ---------------------------------------------------------------------------
_LANES = 128       # vreg lane width
_SUBLANES = 8      # f32 vreg sublane count
_TILE_ROWS = 1024  # rows per grid step: (1024, 128) f32 = 512 KiB tile
_ACC_ROWS = 64     # accumulator scratch rows: (64, 128) f32 = 8 vregs
_NUM_SPLITS = 2    # leading "parallel" grid axis (both TCs on v7x)
_STREAM_BLOCK_ELEMS = _NUM_SPLITS * _TILE_ROWS * _LANES

# Thresholds for choosing the whole-tensor-in-VMEM fused path.
_VMEM_PATH_MAX_TOTAL_ELEMS = 1 << 20    # ~4 MiB f32 total
_VMEM_PATH_MAX_TENSOR_ELEMS = 1 << 17   # 128K elements per tensor


# ---------------------------------------------------------------------------
# Primary path: all tensors resident in VMEM, one kernel invocation.
# ---------------------------------------------------------------------------
def _fused_small_loss(items):
    """items: list of (jnp 2-D array, python-float target)."""
    xs, targets, inv_ns = [], [], []
    for x, t in items:
        # Collapse leading dims only (bitcast for contiguous arrays — no copy).
        x2 = x.reshape(-1, x.shape[-1]) if x.ndim >= 2 else x.reshape(1, -1)
        xs.append(x2)
        targets.append(float(t))
        inv_ns.append(1.0 / float(x.size))

    n = len(xs)

    def kernel(*refs):
        in_refs, o_ref = refs[:-1], refs[-1]
        total = jnp.zeros((), jnp.float32)
        for ref, t, inv_n in zip(in_refs, targets, inv_ns):
            v = ref[...].astype(jnp.float32)          # upcast in vregs
            d = v - t if t != 0.0 else v
            total = total + jnp.sum(d * d) * jnp.float32(inv_n)
        o_ref[...] = jnp.reshape(total, (1, 1))

    total_elems = sum(int(x.size) for x in xs)
    bytes_in = sum(int(x.size) * x.dtype.itemsize for x in xs)
    out = pl.pallas_call(
        kernel,
        out_shape=jax.ShapeDtypeStruct((1, 1), jnp.float32),
        cost_estimate=pl.CostEstimate(
            flops=3 * total_elems,          # sub + mul + add per element
            transcendentals=0,
            bytes_accessed=bytes_in + 4,
        ),
    )(*xs)
    return jnp.reshape(out, ())


# ---------------------------------------------------------------------------
# Streaming fallback: HBM-bound sum of squares over a pre-scaled stream.
# ---------------------------------------------------------------------------
def _stream_sq_sum_kernel(y_ref, o_ref, acc_ref):
    i = pl.program_id(1)

    @pl.when(i == 0)
    def _():
        acc_ref[...] = jnp.zeros_like(acc_ref)

    # Load the (1024,128) tile in 64-row chunks straight into the 8-vreg
    # register-resident accumulator: ~1 vld + 2 VALU ops per vreg, no
    # per-step accumulator VMEM round trip, 8 independent add chains.
    a = acc_ref[...]
    for j in range(_TILE_ROWS // _ACC_ROWS):
        y = y_ref[j * _ACC_ROWS:(j + 1) * _ACC_ROWS, :]
        a = a + y * y
    acc_ref[...] = a

    @pl.when(i == pl.num_programs(1) - 1)
    def _():
        acc = acc_ref[...]
        p = acc[0:_SUBLANES, :]
        for r in range(_SUBLANES, _ACC_ROWS, _SUBLANES):   # 7 adds
            p = p + acc[r:r + _SUBLANES, :]
        o_ref[...] = p


def _streaming_loss(ys):
    y = jnp.concatenate(ys)
    pad = (-y.size) % _STREAM_BLOCK_ELEMS
    if pad:
        y = jnp.pad(y, (0, pad))   # zeros contribute nothing to sum(y^2)

    rows = y.size // _LANES
    y2d = y.reshape(rows, _LANES)
    steps_total = rows // _TILE_ROWS
    steps_per_split = steps_total // _NUM_SPLITS
    out_rows = _NUM_SPLITS * _SUBLANES

    partials = pl.pallas_call(
        _stream_sq_sum_kernel,
        out_shape=jax.ShapeDtypeStruct((out_rows, _LANES), jnp.float32),
        grid_spec=pltpu.PrefetchScalarGridSpec(
            num_scalar_prefetch=0,
            grid=(_NUM_SPLITS, steps_per_split),
            in_specs=[
                pl.BlockSpec(
                    (_TILE_ROWS, _LANES),
                    lambda c, i, s=steps_per_split: (c * s + i, 0),
                ),
            ],
            out_specs=pl.BlockSpec((_SUBLANES, _LANES), lambda c, i: (c, 0)),
            scratch_shapes=[pltpu.VMEM((_ACC_ROWS, _LANES), jnp.float32)],
        ),
        compiler_params=pltpu.CompilerParams(
            dimension_semantics=("parallel", "arbitrary"),
        ),
        cost_estimate=pl.CostEstimate(
            flops=2 * y2d.size,
            transcendentals=0,
            bytes_accessed=y2d.size * 4 + out_rows * _LANES * 4,
        ),
    )(y2d)

    # Tiny (16,128) reduction of per-split / per-lane partial sums
    # (rare large-input path only; one extra tiny dispatch is negligible).
    return jnp.sum(partials)


# ---------------------------------------------------------------------------
# Public wrapper (matches DiscriminatorLoss.forward semantics)
# ---------------------------------------------------------------------------
def discriminator_loss(discriminator_outputs, discriminator_real_outputs,
                       *, _force_streaming=False, **_batch):
    """JAX/Pallas equivalent of DiscriminatorLoss.forward."""
    items = []  # (array, target)
    for x in discriminator_real_outputs:
        x = jnp.asarray(x)
        if x.size == 0:
            # TODO(synk): PyTorch's mean over an empty tensor is NaN; we skip empties.
            continue
        items.append((x, 1.0))
    for x in discriminator_outputs:
        x = jnp.asarray(x)
        if x.size == 0:
            continue
        items.append((x, 0.0))

    if not items:
        # TODO(synk): PyTorch reference errors on empty lists; return 0 here.
        return jnp.zeros((), jnp.float32)

    total_elems = sum(int(x.size) for x, _ in items)
    max_elems = max(int(x.size) for x, _ in items)
    use_vmem_path = (not _force_streaming
                     and total_elems <= _VMEM_PATH_MAX_TOTAL_ELEMS
                     and max_elems <= _VMEM_PATH_MAX_TENSOR_ELEMS)

    if use_vmem_path:
        return _fused_small_loss(items)

    # Large-input fallback: stream y = (x - target)/sqrt(numel), sum y^2.
    ys = []
    for x, t in items:
        xf = x.astype(jnp.float32).reshape(-1)
        scale = 1.0 / math.sqrt(xf.size)
        ys.append((xf - t) * scale if t != 0.0 else xf * scale)
    return _streaming_loss(ys)


def _reference_loss(discriminator_outputs, discriminator_real_outputs):
    l_r = [jnp.mean((d - 1.0) ** 2) for d in discriminator_real_outputs]
    l_g = [jnp.mean(d ** 2) for d in discriminator_outputs]
    return jnp.sum(jnp.stack(l_r)) + jnp.sum(jnp.stack(l_g))


if __name__ == "__main__":
    key = jax.random.PRNGKey(0)
    k = jax.random.split(key, 6)

    # Small, HiFi-GAN-discriminator-like output shapes (varying rank/shape).
    discriminator_real_outputs = [
        jax.random.normal(k[0], (2, 1, 16), dtype=jnp.float32),
        jax.random.normal(k[1], (2, 4, 8, 8), dtype=jnp.float32),
        jax.random.normal(k[2], (2, 32), dtype=jnp.float32),
    ]
    discriminator_outputs = [
        jax.random.normal(k[3], (2, 1, 16), dtype=jnp.float32),
        jax.random.normal(k[4], (2, 4, 8, 8), dtype=jnp.float32),
        jax.random.normal(k[5], (2, 32), dtype=jnp.float32),
    ]

    ref = _reference_loss(discriminator_outputs, discriminator_real_outputs)

    # Primary (fused, whole-tensors-in-VMEM) path.
    loss = discriminator_loss(discriminator_outputs, discriminator_real_outputs)
    loss = jax.block_until_ready(loss)
    assert jnp.allclose(loss, ref, rtol=1e-5, atol=1e-5), (loss, ref)

    # Also exercise the large-input streaming fallback on the same data.
    loss_stream = discriminator_loss(
        discriminator_outputs, discriminator_real_outputs, _force_streaming=True)
    loss_stream = jax.block_until_ready(loss_stream)
    assert jnp.allclose(loss_stream, ref, rtol=1e-5, atol=1e-5), (loss_stream, ref)

    print("KERNEL_OK")
</pallas_src>

<mosaic_0001>
module attributes {stable_mosaic.version = 11 : i64} {
  func.func @kernel(%arg0: memref<2x16xf32, #tpu.memory_space<vmem>>, %arg1: memref<64x8xf32, #tpu.memory_space<vmem>>, %arg2: memref<2x32xf32, #tpu.memory_space<vmem>>, %arg3: memref<2x16xf32, #tpu.memory_space<vmem>>, %arg4: memref<64x8xf32, #tpu.memory_space<vmem>>, %arg5: memref<2x32xf32, #tpu.memory_space<vmem>>, %arg6: memref<1x1xf32, #tpu.memory_space<vmem>>) attributes {dimension_semantics = [], scalar_prefetch = 0 : i64, scratch_operands = 0 : i64, tpu.core_type = #tpu.core_type<tc>} {
    %c0 = arith.constant 0 : index
    %c0_0 = arith.constant 0 : index
    %0 = vector.load %arg0[%c0, %c0_0] : memref<2x16xf32, #tpu.memory_space<vmem>>, vector<2x16xf32>
    %cst = arith.constant 1.000000e+00 : f32
    %1 = vector.broadcast %cst : f32 to vector<2x16xf32>
    %2 = arith.subf %0, %1 : vector<2x16xf32>
    %3 = arith.mulf %2, %2 : vector<2x16xf32>
    %4 = vector.shape_cast %3 : vector<2x16xf32> to vector<1x2x16xf32>
    %cst_1 = arith.constant dense<0.000000e+00> : vector<1xf32>
    %5 = vector.multi_reduction <add>, %4, %cst_1 [1, 2] : vector<1x2x16xf32> to vector<1xf32>
    %6 = vector.shape_cast %5 : vector<1xf32> to vector<1x1x1xf32>
    %7 = vector.extract %6[0, 0, 0] : f32 from vector<1x1x1xf32>
    %cst_2 = arith.constant 3.125000e-02 : f32
    %8 = arith.mulf %7, %cst_2 : f32
    %cst_3 = arith.constant 0.000000e+00 : f32
    %9 = arith.addf %cst_3, %8 : f32
    %c0_4 = arith.constant 0 : index
    %c0_5 = arith.constant 0 : index
    %10 = vector.load %arg1[%c0_4, %c0_5] : memref<64x8xf32, #tpu.memory_space<vmem>>, vector<64x8xf32>
    %cst_6 = arith.constant 1.000000e+00 : f32
    %11 = vector.broadcast %cst_6 : f32 to vector<64x8xf32>
    %12 = arith.subf %10, %11 : vector<64x8xf32>
    %13 = arith.mulf %12, %12 : vector<64x8xf32>
    %14 = vector.shape_cast %13 : vector<64x8xf32> to vector<1x64x8xf32>
    %cst_7 = arith.constant dense<0.000000e+00> : vector<1xf32>
    %15 = vector.multi_reduction <add>, %14, %cst_7 [1, 2] : vector<1x64x8xf32> to vector<1xf32>
    %16 = vector.shape_cast %15 : vector<1xf32> to vector<1x1x1xf32>
    %17 = vector.extract %16[0, 0, 0] : f32 from vector<1x1x1xf32>
    %cst_8 = arith.constant 0.001953125 : f32
    %18 = arith.mulf %17, %cst_8 : f32
    %19 = arith.addf %9, %18 : f32
    %c0_9 = arith.constant 0 : index
    %c0_10 = arith.constant 0 : index
    %20 = vector.load %arg2[%c0_9, %c0_10] : memref<2x32xf32, #tpu.memory_space<vmem>>, vector<2x32xf32>
    %cst_11 = arith.constant 1.000000e+00 : f32
    %21 = vector.broadcast %cst_11 : f32 to vector<2x32xf32>
    %22 = arith.subf %20, %21 : vector<2x32xf32>
    %23 = arith.mulf %22, %22 : vector<2x32xf32>
    %24 = vector.shape_cast %23 : vector<2x32xf32> to vector<1x2x32xf32>
    %cst_12 = arith.constant dense<0.000000e+00> : vector<1xf32>
    %25 = vector.multi_reduction <add>, %24, %cst_12 [1, 2] : vector<1x2x32xf32> to vector<1xf32>
    %26 = vector.shape_cast %25 : vector<1xf32> to vector<1x1x1xf32>
    %27 = vector.extract %26[0, 0, 0] : f32 from vector<1x1x1xf32>
    %cst_13 = arith.constant 1.562500e-02 : f32
    %28 = arith.mulf %27, %cst_13 : f32
    %29 = arith.addf %19, %28 : f32
    %c0_14 = arith.constant 0 : index
    %c0_15 = arith.constant 0 : index
    %30 = vector.load %arg3[%c0_14, %c0_15] : memref<2x16xf32, #tpu.memory_space<vmem>>, vector<2x16xf32>
    %31 = arith.mulf %30, %30 : vector<2x16xf32>
    %32 = vector.shape_cast %31 : vector<2x16xf32> to vector<1x2x16xf32>
    %cst_16 = arith.constant dense<0.000000e+00> : vector<1xf32>
    %33 = vector.multi_reduction <add>, %32, %cst_16 [1, 2] : vector<1x2x16xf32> to vector<1xf32>
    %34 = vector.shape_cast %33 : vector<1xf32> to vector<1x1x1xf32>
    %35 = vector.extract %34[0, 0, 0] : f32 from vector<1x1x1xf32>
    %cst_17 = arith.constant 3.125000e-02 : f32
    %36 = arith.mulf %35, %cst_17 : f32
    %37 = arith.addf %29, %36 : f32
    %c0_18 = arith.constant 0 : index
    %c0_19 = arith.constant 0 : index
    %38 = vector.load %arg4[%c0_18, %c0_19] : memref<64x8xf32, #tpu.memory_space<vmem>>, vector<64x8xf32>
    %39 = arith.mulf %38, %38 : vector<64x8xf32>
    %40 = vector.shape_cast %39 : vector<64x8xf32> to vector<1x64x8xf32>
    %cst_20 = arith.constant dense<0.000000e+00> : vector<1xf32>
    %41 = vector.multi_reduction <add>, %40, %cst_20 [1, 2] : vector<1x64x8xf32> to vector<1xf32>
    %42 = vector.shape_cast %41 : vector<1xf32> to vector<1x1x1xf32>
    %43 = vector.extract %42[0, 0, 0] : f32 from vector<1x1x1xf32>
    %cst_21 = arith.constant 0.001953125 : f32
    %44 = arith.mulf %43, %cst_21 : f32
    %45 = arith.addf %37, %44 : f32
    %c0_22 = arith.constant 0 : index
    %c0_23 = arith.constant 0 : index
    %46 = vector.load %arg5[%c0_22, %c0_23] : memref<2x32xf32, #tpu.memory_space<vmem>>, vector<2x32xf32>
    %47 = arith.mulf %46, %46 : vector<2x32xf32>
    %48 = vector.shape_cast %47 : vector<2x32xf32> to vector<1x2x32xf32>
    %cst_24 = arith.constant dense<0.000000e+00> : vector<1xf32>
    %49 = vector.multi_reduction <add>, %48, %cst_24 [1, 2] : vector<1x2x32xf32> to vector<1xf32>
    %50 = vector.shape_cast %49 : vector<1xf32> to vector<1x1x1xf32>
    %51 = vector.extract %50[0, 0, 0] : f32 from vector<1x1x1xf32>
    %cst_25 = arith.constant 1.562500e-02 : f32
    %52 = arith.mulf %51, %cst_25 : f32
    %53 = arith.addf %45, %52 : f32
    %54 = vector.broadcast %53 : f32 to vector<1x1xf32>
    %c0_26 = arith.constant 0 : index
    %c0_27 = arith.constant 0 : index
    %55 = vector.load %arg6[%c0_26, %c0_27] : memref<1x1xf32, #tpu.memory_space<vmem>>, vector<1x1xf32>
    tpu.vector_store %arg6[%c0_26, %c0_27], %54 {strides = array<i32>} : memref<1x1xf32, #tpu.memory_space<vmem>>, vector<1x1xf32>,
    return
  }
}

</mosaic_0001>

<bundles_post_ra>
// kernel: tpu_custom_call.1
= control target key start
LH: loop header
LB: loop body
LE: loop exit
PB: predicated region body
PF: predicated region fallthrough
CT: control target
= control target key end

     0   :  { %vm27_vm0 = vcmask 123904   ;;  %vm94_vm1 = vcmask 254976   ;;  %vm64_vm2 = vcmask 64512   ;;  %s369_s0 = inlined_call_operand.vmem [shape: f32[2,16], index: 0, kind: input, shape index: {}]   ;;  %s370_s1 = inlined_call_operand.vmem [shape: f32[64,8], index: 1, kind: input, shape index: {}]   ;;  %s371_s2 = inlined_call_operand.vmem [shape: f32[2,32], index: 2, kind: input, shape index: {}]   ;;  %s372_s3 = inlined_call_operand.vmem [shape: f32[2,16], index: 3, kind: input, shape index: {}]   ;;  %s373_s4 = inlined_call_operand.vmem [shape: f32[64,8], index: 4, kind: input, shape index: {}]   ;;  %s374_s5 = inlined_call_operand.vmem [shape: f32[2,32], index: 5, kind: input, shape index: {}]   ;;  %s375_s6 = inlined_call_operand.hbm [shape: f32[1,1], index: 6, kind: output, shape index: {}]  }
   0x1   :  { %v24_v0 = vld [vmem:[%s369_s0] sm:$0x3]  ;;  %v41_v6 = vld [vmem:[%s370_s1 + $0x8] sm:$0xff]  ;;  %v42_v8 = vld [vmem:[%s370_s1 + $0x10] sm:$0xff] }
   0x2   :  { %v91_v1 = vld [vmem:[%s371_s2] sm:$0x3]  ;;  %v194_v2 = vadd.f32 -1.0, %v24_v0  ;;  %v43_v9 = vld [vmem:[%s370_s1 + $0x18] sm:$0xff]  ;;  %v196_v12 = vadd.f32 -1.0, %v41_v6  ;;  %v45_v15 = vld [vmem:[%s370_s1 + $0x28] sm:$0xff] }
   0x3   :  { %v203_v3 = vadd.f32 -1.0, %v91_v1  ;;  %v107_v4 = vld [vmem:[%s372_s3] sm:$0x3]  ;;  %v197_v16 = vadd.f32 -1.0, %v42_v8  ;;  %v198_v17 = vadd.f32 -1.0, %v43_v9  ;;  %v46_v18 = vld [vmem:[%s370_s1 + $0x30] sm:$0xff] }
   0x4   :  { %v40_v5 = vld [vmem:[%s370_s1] sm:$0xff]  ;;  %v108_v7 = vmul.f32 %v107_v4, %v107_v4  ;;  %v26_v13 = vmul.f32 %v194_v2, %v194_v2  ;;  %v200_v22 = vadd.f32 -1.0, %v45_v15  ;;  %v47_v24 = vld [vmem:[%s370_s1 + $0x38] sm:$0xff]  ;;  %v57_v25 = vmul.f32 %v196_v12, %v196_v12  ;;  %v122_v32 = vld [vmem:[%s373_s4 + $0x8] sm:$0xff] }
   0x5   :  { %v44_v10 = vld [vmem:[%s370_s1 + $0x20] sm:$0xff]  ;;  %v195_v11 = vadd.f32 -1.0, %v40_v5  ;;  %v93_v14 = vmul.f32 %v203_v3, %v203_v3  ;;  %v58_v26 = vmul.f32 %v197_v16, %v197_v16  ;;  %v59_v27 = vmul.f32 %v198_v17, %v198_v17 }
   0x6   :  { %v199_v19 = vadd.f32 -1.0, %v44_v10  ;;  %v28_v20 = vsel %vm27_vm0, %v26_v13, 0.0  ;;  %v163_v28 = vld [vmem:[%s374_s5] sm:$0x3]  ;;  %v109_v29 = vsel %vm27_vm0, %v108_v7, 0.0  ;;  %v201_v30 = vadd.f32 -1.0, %v46_v18 }
   0x7   :  { %v95_v21 = vsel %vm94_vm1, %v93_v14, 0.0  ;;  %v56_v23 = vmul.f32 %v195_v11, %v195_v11  ;;  %29 = vadd.xlane.f32.xlu0 %v28_v20  ;;  %v121_v31 = vld [vmem:[%s373_s4] sm:$0xff] }
   0x8   :  { %96 = vadd.xlane.f32.xlu1 %v95_v21 }
   0x9   :  { %11 = vsyncpa [#allocation3], 0  ;;  %v60_v33 = vmul.f32 %v199_v19, %v199_v19  ;;  %v65_v34 = vsel %vm64_vm2, %v56_v23, 0.0  ;;  %v66_v35 = vsel %vm64_vm2, %v57_v25, 0.0  ;;  %v68_v36 = vsel %vm64_vm2, %v58_v26, 0.0  ;;  %v123_v37 = vld [vmem:[%s373_s4 + $0x10] sm:$0xff] }
   0xa   :  { %v124_v38 = vld [vmem:[%s373_s4 + $0x18] sm:$0xff]  ;;  %v202_v39 = vadd.f32 -1.0, %v47_v24  ;;  %v61_v40 = vmul.f32 %v200_v22, %v200_v22  ;;  %v67_v41 = vadd.f32 %v66_v35, %v65_v34  ;;  %v125_v42 = vld [vmem:[%s373_s4 + $0x20] sm:$0xff]  ;;  %v70_v43 = vsel %vm64_vm2, %v59_v27, 0.0  ;;  %v126_v53 = vld [vmem:[%s373_s4 + $0x28] sm:$0xff]  ;;  %s241_s18 = smov [#allocation2]  }
   0xb   :  { %v164_v44 = vmul.f32 %v163_v28, %v163_v28  ;;  %v129_v45 = vmul.f32 %v121_v31, %v121_v31  ;;  %v130_v46 = vmul.f32 %v122_v32, %v122_v32  ;;  %v131_v48 = vmul.f32 %v123_v37, %v123_v37  ;;  %v127_v61 = vld [vmem:[%s373_s4 + $0x30] sm:$0xff]  ;;  %v128_v3 = vld [vmem:[%s373_s4 + $0x38] sm:$0xff]  ;;  %s186_s19 = sshll.u32 %s241_s18, 4  ;;  %s187_s19 = int_to_ptr.vmem [resolvable:$true] %s186_s19 }
   0xc   :  { %110 = vadd.xlane.f32.xlu1 %v109_v29  ;;  %v69_v47 = vadd.f32 %v68_v36, %v67_v41  ;;  %v132_v49 = vmul.f32 %v124_v38, %v124_v38  ;;  %v62_v50 = vmul.f32 %v201_v30, %v201_v30  ;;  %v72_v51 = vsel %vm64_vm2, %v60_v33, 0.0  ;;  %s217_s5 = scalar_lea.vmem %s187_s19, 16  ;;  %s221_s22 = scalar_lea.vmem %s187_s19, 32 }
   0xd   :  { %v165_v52 = vsel %vm94_vm1, %v164_v44, 0.0  ;;  %v133_v54 = vmul.f32 %v125_v42, %v125_v42  ;;  %v137_v56 = vsel %vm64_vm2, %v129_v45, 0.0  ;;  %v138_v57 = vsel %vm64_vm2, %v130_v46, 0.0  ;;  %p218_p0 = scmp.ne.s32.totalorder %s187_s19, %s217_s5  ;;  %p222_p1 = scmp.lt.s32.totalorder %s187_s19, %s187_s19 }
   0xe   :  { %v71_v55 = vadd.f32 %v70_v43, %v69_v47  ;;  %v140_v58 = vsel %vm64_vm2, %v131_v48, 0.0  ;;  %v63_v59 = vmul.f32 %v202_v39, %v202_v39  ;;  %v74_v60 = vsel %vm64_vm2, %v61_v40, 0.0  ;;  %p223_p2 = scmp.lt.s32.totalorder %s221_s22, %s217_s5 }
   0xf   :  { %v139_v62 = vadd.f32 %v138_v57, %v137_v56  ;;  %v134_v0 = vmul.f32 %v126_v53, %v126_v53  ;;  %v142_v1 = vsel %vm64_vm2, %v132_v49, 0.0  ;;  %v76_v2 = vsel %vm64_vm2, %v62_v50, 0.0 }
  0x10   :  { %166 = vadd.xlane.f32.xlu1 %v165_v52  ;;  %v73_v63 = vadd.f32 %v72_v51, %v71_v55  ;;  %v135_v6 = vmul.f32 %v127_v61, %v127_v61  ;;  %v144_v7 = vsel %vm64_vm2, %v133_v54, 0.0  ;;  %v78_v8 = vsel %vm64_vm2, %v63_v59, 0.0  ;;  %p224_p3 = por %p223_p2, %p222_p1 }
  0x11   :  { %v141_v4 = vadd.f32 %v140_v58, %v139_v62  ;;  %v136_v11 = vmul.f32 %v128_v3, %v128_v3  ;;  %v146_v12 = vsel %vm64_vm2, %v134_v0, 0.0  ;;  %vm178_vm3 = vcmask 0  }
  0x12   :  { %v75_v5 = vadd.f32 %v74_v60, %v73_v63  ;;  %v148_v15 = vsel %vm64_vm2, %v135_v6, 0.0  ;;  %p225_p4 = pnand %p224_p3, %p218_p0 }
  0x13   :  { %v143_v9 = vadd.f32 %v142_v1, %v141_v4  ;;  %v150_v17 = vsel %vm64_vm2, %v136_v11, 0.0 }
  0x14   :  { %v77_v10 = vadd.f32 %v76_v2, %v75_v5 }
  0x15   :  { %v145_v13 = vadd.f32 %v144_v7, %v143_v9 }
  0x16   :  { %v79_v14 = vadd.f32 %v78_v8, %v77_v10 }
  0x17   :  { %v147_v16 = vadd.f32 %v146_v12, %v145_v13 }
  0x18   :  { %80 = vadd.xlane.f32.xlu0 %v79_v14 }
  0x19   :  { %v149_v18 = vadd.f32 %v148_v15, %v147_v16 }
  0x1b   :  { %v151_v19 = vadd.f32 %v150_v17, %v149_v18 }
  0x1d   :  { %152 = vadd.xlane.f32.xlu0 %v151_v19 }
  0x94   :  { %v30_v20 = vpop.xlane.xlu0 %29 }
  0x95   :  { %v97_v21 = vpop.xlane.xlu1 %96  ;;  %v31_v22 = vrot.slane %v30_v20, 4 }
  0x96   :  { %v98_v27 = vrot.slane %v97_v21, 4 }
  0x97   :  { %v32_v23 = vadd.f32 %v31_v22, %v30_v20 }
  0x98   :  { %v99_v32 = vadd.f32 %v98_v27, %v97_v21 }
  0x99   :  { %v33_v24 = vrot.slane %v32_v23, 2  ;;  %v111_v25 = vpop.xlane.xlu1 %110 }
  0x9a   :  { %v112_v29 = vrot.slane %v111_v25, 4  ;;  %v100_v35 = vrot.slane %v99_v32, 2 }
  0x9b   :  { %v34_v26 = vadd.f32 %v33_v24, %v32_v23 }
  0x9c   :  { %v113_v33 = vadd.f32 %v112_v29, %v111_v25  ;;  %v101_v41 = vadd.f32 %v100_v35, %v99_v32 }
  0x9d   :  { %v35_v28 = vrot.slane %v34_v26, 1  ;;  %v167_v30 = vpop.xlane.xlu1 %166 }
  0x9e   :  { %v168_v34 = vrot.slane %v167_v30, 4  ;;  %v114_v37 = vrot.slane %v113_v33, 2  ;;  %v102_v49 = vrot.slane %v101_v41, 1 }
  0x9f   :  { %v36_v31 = vadd.f32 %v35_v28, %v34_v26 }
  0xa0   :  { %v169_v39 = vadd.f32 %v168_v34, %v167_v30  ;;  %v115_v45 = vadd.f32 %v114_v37, %v113_v33  ;;  %v103_v56 = vadd.f32 %v102_v49, %v101_v41 }
  0xa1   :  { %204 = vpush %v36_v31 }
  0xa2   :  { %v170_v43 = vrot.slane %v169_v39, 2  ;;  %v116_v52 = vrot.slane %v115_v45, 1 }
  0xa4   :  { %v171_v50 = vadd.f32 %v170_v43, %v169_v39  ;;  %v117_v57 = vadd.f32 %v116_v52, %v115_v45 }
  0xa5   :  { %v81_v36 = vpop.xlane.xlu0 %80 }
  0xa6   :  { %v82_v38 = vrot.slane %v81_v36, 4  ;;  %v172_v58 = vrot.slane %v171_v50, 1 }
  0xa8   :  { %v83_v40 = vadd.f32 %v82_v38, %v81_v36  ;;  %v173_v61 = vadd.f32 %v172_v58, %v171_v50 }
  0xaa   :  { %v84_v42 = vrot.slane %v83_v40, 2  ;;  %v153_v44 = vpop.xlane.xlu0 %152 }
  0xab   :  { %v154_v46 = vrot.slane %v153_v44, 4 }
  0xac   :  { %v85_v47 = vadd.f32 %v84_v42, %v83_v40 }
  0xad   :  { %v155_v48 = vadd.f32 %v154_v46, %v153_v44 }
  0xae   :  { %v86_v51 = vrot.slane %v85_v47, 1 }
  0xaf   :  { %v156_v53 = vrot.slane %v155_v48, 2 }
  0xb0   :  { %v87_v54 = vadd.f32 %v86_v51, %v85_v47 }
  0xb1   :  { %v157_v55 = vadd.f32 %v156_v53, %v155_v48 }
  0xb2   :  { %206 = vpush %v87_v54 }
  0xb3   :  { %208 = vpush %v103_v56  ;;  %v158_v59 = vrot.slane %v157_v55, 1 }
  0xb4   :  { %210 = vpush %v117_v57 }
  0xb5   :  { %v159_v60 = vadd.f32 %v158_v59, %v157_v55 }
  0xb7   :  { %212 = vpush %v159_v60 }
  0xb8   :  { %214 = vpush %v173_v61 }
  0xd2   :  { %s205_s4 = spop %204 }
  0xd3   :  { %s38_s7 = smul.f32 0.03125, %s205_s4 }
  0xe3   :  { %s207_s2 = spop %206 }
  0xe4   :  { %s89_s8 = smul.f32 0.001953125, %s207_s2  ;;  %s209_s9 = spop %208 }
  0xe5   :  { %s211_s3 = spop %210  ;;  %s105_s11 = smul.f32 0.015625, %s209_s9 }
  0xe6   :  { %s90_s10 = sadd.f32 %s89_s8, %s38_s7  ;;  %s119_s12 = smul.f32 0.03125, %s211_s3 }
  0xe8   :  { %s106_s13 = sadd.f32 %s105_s11, %s90_s10  ;;  %s213_s14 = spop %212 }
  0xe9   :  { %s215_s15 = spop %214  ;;  %s161_s17 = smul.f32 0.001953125, %s213_s14 }
  0xea   :  { %s120_s16 = sadd.f32 %s119_s12, %s106_s13  ;;  %s175_s21 = smul.f32 0.015625, %s215_s15 }
  0xec   :  { %s162_s20 = sadd.f32 %s161_s17, %s120_s16 }
  0xee   :  { %s176_s1 = sadd.f32 %s175_s21, %s162_s20 }
  0xf0   :  { %v177_v62 = vstv %s176_s1 }
  0xf1   :  { %179 = vst.msk [vmem:[#allocation2] sm:$0x1] %vm178_vm3, %v177_v62 }
  0xf2   :  { %228 = shalt.err (!%p225_p4)
}
  0xf3   :  { %s229_s25 = scalar_lea.hbm %s375_s6, 16 }
  0xf4   :  { %p230_p5 = scmp.ne.s32.totalorder %s375_s6, %s229_s25  ;;  %p233_p6 = scmp.lt.u32.totalorder %s229_s25, %s375_s6 }
  0xf6   :  { %p235_p7 = pnand %p233_p6, %p230_p5 }
  0xf8   :  { %238 = shalt.err (!%p235_p7)
}
  0xf9   :  { %189 = dma.vmem_to_hbm [thread:$0]  %s187_s19, 16, %s375_s6, [#allocation3]  }
  0xfa   :  { %239 = dma.done.wait [#allocation3], 16  }
  0xfb   :  { %240 = vsyncadd [#allocation3], 4294967280 }
  0xfc   :  { %193 = vsyncpa [#allocation3], 1 }

</bundles_post_ra>
